<compile_context>
chip_gen: v7x
topology: tpu7x:2x2x1
jax: 0.10.0
libtpu: 0.0.40
codegen_flags: <defaults>
</compile_context>

<pallas_src>
import functools

import jax
import jax.numpy as jnp
from jax.experimental import pallas as pl
from jax.experimental.pallas import tpu as pltpu


def _round_up(x: int, m: int) -> int:
    return ((x + m - 1) // m) * m


def _make_blo_kernel(matmul_dtype):
    def kernel(x_ref, w1_ref, w2_ref, a0_ref, a1_ref, b_ref, o_ref, acc_ref):
        k = pl.program_id(2)

        @pl.when(k == 0)
        def _():
            acc_ref[...] = jnp.zeros_like(acc_ref)

        a0 = a0_ref[...]          # (tn, 1)
        a1 = a1_ref[...]          # (1, tk)

        # Effective weight for this (n, k) tile — keep the combine in f32
        # (v5e VPU has no bf16, and this protects accuracy everywhere).
        w_eff = (a0 * a1) * w1_ref[...] + ((1.0 - a0) * (1.0 - a1)) * w2_ref[...]

        x_tile = x_ref[...]       # (tm, tk)
        if matmul_dtype is not None:
            x_tile = x_tile.astype(matmul_dtype)
            w_eff = w_eff.astype(matmul_dtype)

        # x (tm, tk) contracted with w_eff (tn, tk) on K -> (tm, tn).
        # No explicit transpose: the MXU takes the transposed RHS natively.
        acc_ref[...] += jax.lax.dot_general(
            x_tile, w_eff,
            dimension_numbers=(((1,), (1,)), ((), ())),
            preferred_element_type=jnp.float32)

        @pl.when(k == pl.num_programs(2) - 1)
        def _():
            o_ref[...] = (acc_ref[...] + b_ref[...]).astype(o_ref.dtype)

    return kernel


@functools.partial(jax.jit, static_argnames=("tm_max", "tn_max", "tk_max",
                                             "matmul_dtype"))
def blo_linear_forward(x, w1, b1, w2, alpha0, alpha1, *,
                       tm_max=256, tn_max=256, tk_max=512,
                       matmul_dtype=None):
    """x: (M, K); w1, w2: (N, K); b1: (N,); alpha0: (N, 1); alpha1: (1, K)."""
    M, K = x.shape
    N, K2 = w1.shape
    assert K2 == K

    # Hardware-aligned tiles, clamped to the (padded) problem size.
    tm = min(tm_max, _round_up(M, 8))
    tn = min(tn_max, _round_up(N, 128))
    tk = min(tk_max, _round_up(K, 128))

    Mp = _round_up(M, tm)
    Np = _round_up(N, tn)
    Kp = _round_up(K, tk)

    def pad2(a, rows, cols):
        return jnp.pad(a, ((0, rows - a.shape[0]), (0, cols - a.shape[1])))

    # Zero padding is exact: padded weight entries are 0, so the alpha combine
    # and the K contraction contribute nothing; padded M/N rows/cols are
    # sliced away at the end.
    xp = pad2(x, Mp, Kp)
    w1p = pad2(w1, Np, Kp)
    w2p = pad2(w2, Np, Kp)
    a0p = pad2(alpha0, Np, 1)
    a1p = pad2(alpha1, 1, Kp)
    bp = pad2(b1.reshape(1, N), 1, Np)

    grid = (Mp // tm, Np // tn, Kp // tk)

    out_padded = pl.pallas_call(
        _make_blo_kernel(matmul_dtype),
        out_shape=jax.ShapeDtypeStruct((Mp, Np), x.dtype),
        grid_spec=pltpu.PrefetchScalarGridSpec(
            num_scalar_prefetch=0,
            grid=grid,
            in_specs=[
                pl.BlockSpec((tm, tk), lambda m, n, k: (m, k)),   # x
                pl.BlockSpec((tn, tk), lambda m, n, k: (n, k)),   # w1
                pl.BlockSpec((tn, tk), lambda m, n, k: (n, k)),   # w2
                pl.BlockSpec((tn, 1), lambda m, n, k: (n, 0)),    # alpha0
                pl.BlockSpec((1, tk), lambda m, n, k: (0, k)),    # alpha1
                pl.BlockSpec((1, tn), lambda m, n, k: (0, n)),    # bias
            ],
            out_specs=pl.BlockSpec((tm, tn), lambda m, n, k: (m, n)),
            scratch_shapes=[pltpu.VMEM((tm, tn), jnp.float32)],
        ),
        compiler_params=pltpu.CompilerParams(
            dimension_semantics=("parallel", "parallel", "arbitrary"),
            vmem_limit_bytes=64 * 1024 * 1024,
        ),
    )(xp, w1p, w2p, a0p, a1p, bp)

    return out_padded[:M, :N]


def blo_linear_reference(x, w1, b1, w2, alpha0, alpha1):
    """Pure-JAX reference mirroring the PyTorch module exactly."""
    x_out = x @ ((alpha0 @ alpha1) * w1).T + b1
    x_pre = x @ (((1.0 - alpha0) @ (1.0 - alpha1)) * w2).T
    return x_out + x_pre


if __name__ == "__main__":
    in_features = 32
    out_features = 32
    batch = 8

    key = jax.random.PRNGKey(0)
    k_x, k_w1, k_b1, k_w2, k_b2, k_a0, k_a1 = jax.random.split(key, 7)

    # PyTorch nn.Linear default init: U(-1/sqrt(in), 1/sqrt(in)).
    bound = 1.0 / jnp.sqrt(jnp.float32(in_features))
    w1 = jax.random.uniform(k_w1, (out_features, in_features), jnp.float32,
                            minval=-bound, maxval=bound)
    b1 = jax.random.uniform(k_b1, (out_features,), jnp.float32,
                            minval=-bound, maxval=bound)
    w2 = jax.random.uniform(k_w2, (out_features, in_features), jnp.float32,
                            minval=-bound, maxval=bound)
    # pretrained_layer's bias exists in the module but is unused (pretrained=True path).
    _b2_unused = jax.random.uniform(k_b2, (out_features,), jnp.float32,
                                    minval=-bound, maxval=bound)

    # alpha ~ N(1.0, 0.005)
    alpha0 = 1.0 + 0.005 * jax.random.normal(k_a0, (out_features, 1), jnp.float32)
    alpha1 = 1.0 + 0.005 * jax.random.normal(k_a1, (1, in_features), jnp.float32)

    x = jax.random.normal(k_x, (batch, in_features), jnp.float32)

    out = blo_linear_forward(x, w1, b1, w2, alpha0, alpha1)
    out = jax.block_until_ready(out)

    ref = blo_linear_reference(x, w1, b1, w2, alpha0, alpha1)
    assert out.shape == (batch, out_features)
    assert jnp.allclose(out, ref, atol=1e-5, rtol=1e-5), "mismatch vs reference"

    print("KERNEL_OK")
</pallas_src>

<mosaic_0001>
module attributes {stable_mosaic.version = 11 : i64} {
  func.func @kernel(%arg0: i32, %arg1: i32, %arg2: i32, %arg3: memref<8x128xf32, #tpu.memory_space<vmem>>, %arg4: memref<128x128xf32, #tpu.memory_space<vmem>>, %arg5: memref<128x128xf32, #tpu.memory_space<vmem>>, %arg6: memref<128x1xf32, #tpu.memory_space<vmem>>, %arg7: memref<1x128xf32, #tpu.memory_space<vmem>>, %arg8: memref<1x128xf32, #tpu.memory_space<vmem>>, %arg9: memref<8x128xf32, #tpu.memory_space<vmem>>, %arg10: memref<8x128xf32, #tpu.memory_space<vmem>>) attributes {dimension_semantics = [#tpu.dimension_semantics<parallel>, #tpu.dimension_semantics<parallel>, #tpu.dimension_semantics<arbitrary>], iteration_bounds = array<i64: 1, 1, 1>, scalar_prefetch = 0 : i64, scratch_operands = 1 : i64, tpu.core_type = #tpu.core_type<tc>, window_params = [{transform_indices = @transform_0, window_bounds = array<i64: 8, 128>}, {transform_indices = @transform_1, window_bounds = array<i64: 128, 128>}, {transform_indices = @transform_2, window_bounds = array<i64: 128, 128>}, {transform_indices = @transform_3, window_bounds = array<i64: 128, 1>}, {transform_indices = @transform_4, window_bounds = array<i64: 1, 128>}, {transform_indices = @transform_5, window_bounds = array<i64: 1, 128>}, {transform_indices = @transform_6, window_bounds = array<i64: 8, 128>}]} {
    %c0_i32 = arith.constant 0 : i32
    %0 = arith.cmpi eq, %arg2, %c0_i32 : i32
    %1 = arith.extui %0 : i1 to i32
    %c0_i32_0 = arith.constant 0 : i32
    %2 = arith.cmpi ne, %1, %c0_i32_0 : i32
    scf.if %2 {
      %cst_18 = arith.constant 0.000000e+00 : f32
      %28 = vector.broadcast %cst_18 : f32 to vector<8x128xf32>
      %c0_19 = arith.constant 0 : index
      %c0_20 = arith.constant 0 : index
      %29 = vector.load %arg10[%c0_19, %c0_20] : memref<8x128xf32, #tpu.memory_space<vmem>>, vector<8x128xf32>
      tpu.vector_store %arg10[%c0_19, %c0_20], %28 {strides = array<i32>} : memref<8x128xf32, #tpu.memory_space<vmem>>, vector<8x128xf32>,
    } else {
    }
    %c0 = arith.constant 0 : index
    %c0_1 = arith.constant 0 : index
    %3 = vector.load %arg6[%c0, %c0_1] : memref<128x1xf32, #tpu.memory_space<vmem>>, vector<128x1xf32>
    %c0_2 = arith.constant 0 : index
    %c0_3 = arith.constant 0 : index
    %4 = vector.load %arg7[%c0_2, %c0_3] : memref<1x128xf32, #tpu.memory_space<vmem>>, vector<1x128xf32>
    %5 = vector.broadcast %3 : vector<128x1xf32> to vector<128x128xf32>
    %6 = vector.broadcast %4 : vector<1x128xf32> to vector<128x128xf32>
    %7 = arith.mulf %5, %6 : vector<128x128xf32>
    %c0_4 = arith.constant 0 : index
    %c0_5 = arith.constant 0 : index
    %8 = vector.load %arg4[%c0_4, %c0_5] : memref<128x128xf32, #tpu.memory_space<vmem>>, vector<128x128xf32>
    %9 = arith.mulf %7, %8 : vector<128x128xf32>
    %cst = arith.constant 1.000000e+00 : f32
    %10 = vector.broadcast %cst : f32 to vector<128x1xf32>
    %11 = arith.subf %10, %3 : vector<128x1xf32>
    %cst_6 = arith.constant 1.000000e+00 : f32
    %12 = vector.broadcast %cst_6 : f32 to vector<1x128xf32>
    %13 = arith.subf %12, %4 : vector<1x128xf32>
    %14 = vector.broadcast %11 : vector<128x1xf32> to vector<128x128xf32>
    %15 = vector.broadcast %13 : vector<1x128xf32> to vector<128x128xf32>
    %16 = arith.mulf %14, %15 : vector<128x128xf32>
    %c0_7 = arith.constant 0 : index
    %c0_8 = arith.constant 0 : index
    %17 = vector.load %arg5[%c0_7, %c0_8] : memref<128x128xf32, #tpu.memory_space<vmem>>, vector<128x128xf32>
    %18 = arith.mulf %16, %17 : vector<128x128xf32>
    %19 = arith.addf %9, %18 : vector<128x128xf32>
    %c0_9 = arith.constant 0 : index
    %c0_10 = arith.constant 0 : index
    %20 = vector.load %arg3[%c0_9, %c0_10] : memref<8x128xf32, #tpu.memory_space<vmem>>, vector<8x128xf32>
    %c0_11 = arith.constant 0 : index
    %c0_12 = arith.constant 0 : index
    %21 = vector.load %arg10[%c0_11, %c0_12] : memref<8x128xf32, #tpu.memory_space<vmem>>, vector<8x128xf32>
    %cst_13 = arith.constant dense<0.000000e+00> : vector<8x128xf32>
    %22 = tpu.matmul %20, %19, %cst_13 {dimension_numbers = #tpu.dot_dimension_numbers<[1], [1], [0], [0], [0, 0, 1, 0], [], []>} : vector<8x128xf32>, vector<128x128xf32>, vector<8x128xf32> -> vector<8x128xf32>
    %23 = arith.addf %21, %22 : vector<8x128xf32>
    %c0_14 = arith.constant 0 : index
    %c0_15 = arith.constant 0 : index
    %24 = vector.load %arg10[%c0_14, %c0_15] : memref<8x128xf32, #tpu.memory_space<vmem>>, vector<8x128xf32>
    tpu.vector_store %arg10[%c0_14, %c0_15], %23 {strides = array<i32>} : memref<8x128xf32, #tpu.memory_space<vmem>>, vector<8x128xf32>,
    %c0_i32_16 = arith.constant 0 : i32
    %25 = arith.cmpi eq, %arg2, %c0_i32_16 : i32
    %26 = arith.extui %25 : i1 to i32
    %c0_i32_17 = arith.constant 0 : i32
    %27 = arith.cmpi ne, %26, %c0_i32_17 : i32
    scf.if %27 {
      %c0_18 = arith.constant 0 : index
      %c0_19 = arith.constant 0 : index
      %28 = vector.load %arg10[%c0_18, %c0_19] : memref<8x128xf32, #tpu.memory_space<vmem>>, vector<8x128xf32>
      %c0_20 = arith.constant 0 : index
      %c0_21 = arith.constant 0 : index
      %29 = vector.load %arg8[%c0_20, %c0_21] : memref<1x128xf32, #tpu.memory_space<vmem>>, vector<1x128xf32>
      %30 = vector.broadcast %29 : vector<1x128xf32> to vector<8x128xf32>
      %31 = arith.addf %28, %30 : vector<8x128xf32>
      %c0_22 = arith.constant 0 : index
      %c0_23 = arith.constant 0 : index
      %32 = vector.load %arg9[%c0_22, %c0_23] : memref<8x128xf32, #tpu.memory_space<vmem>>, vector<8x128xf32>
      tpu.vector_store %arg9[%c0_22, %c0_23], %31 {strides = array<i32>} : memref<8x128xf32, #tpu.memory_space<vmem>>, vector<8x128xf32>,
    } else {
    }
    return
  }
  func.func @transform_0(%arg0: i32, %arg1: i32, %arg2: i32) -> (i32, i32) {
    %c0_i32 = arith.constant 0 : i32
    return %arg0, %arg2 : i32, i32
  }
  func.func @transform_1(%arg0: i32, %arg1: i32, %arg2: i32) -> (i32, i32) {
    %c0_i32 = arith.constant 0 : i32
    return %arg1, %arg2 : i32, i32
  }
  func.func @transform_2(%arg0: i32, %arg1: i32, %arg2: i32) -> (i32, i32) {
    %c0_i32 = arith.constant 0 : i32
    return %arg1, %arg2 : i32, i32
  }
  func.func @transform_3(%arg0: i32, %arg1: i32, %arg2: i32) -> (i32, i32) {
    %c0_i32 = arith.constant 0 : i32
    %c0_i32_0 = arith.constant 0 : i32
    return %arg1, %c0_i32 : i32, i32
  }
  func.func @transform_4(%arg0: i32, %arg1: i32, %arg2: i32) -> (i32, i32) {
    %c0_i32 = arith.constant 0 : i32
    %c0_i32_0 = arith.constant 0 : i32
    return %c0_i32, %arg2 : i32, i32
  }
  func.func @transform_5(%arg0: i32, %arg1: i32, %arg2: i32) -> (i32, i32) {
    %c0_i32 = arith.constant 0 : i32
    %c0_i32_0 = arith.constant 0 : i32
    return %c0_i32, %arg1 : i32, i32
  }
  func.func @transform_6(%arg0: i32, %arg1: i32, %arg2: i32) -> (i32, i32) {
    %c0_i32 = arith.constant 0 : i32
    return %arg0, %arg1 : i32, i32
  }
}

</mosaic_0001>

<bundles_post_ra>
// kernel: blo_linear_forward.1
= control target key start
LH: loop header
LB: loop body
LE: loop exit
PB: predicated region body
PF: predicated region fallthrough
CT: control target
= control target key end

     0   :  { %11 = vsyncpa [#allocation4], 0  ;;  %s969_s0 = inlined_call_operand.hbm [shape: f32[8,128], index: 0, kind: input, shape index: {}]   ;;  %s970_s1 = inlined_call_operand.hbm [shape: f32[128,128], index: 1, kind: input, shape index: {}]   ;;  %s971_s2 = inlined_call_operand.hbm [shape: f32[128,128], index: 2, kind: input, shape index: {}]   ;;  %s972_s3 = inlined_call_operand.hbm [shape: f32[128,1], index: 3, kind: input, shape index: {}]   ;;  %s973_s4 = inlined_call_operand.hbm [shape: f32[1,128], index: 4, kind: input, shape index: {}]   ;;  %s974_s5 = inlined_call_operand.hbm [shape: f32[1,128], index: 5, kind: input, shape index: {}]   ;;  %s975_s6 = inlined_call_operand.hbm [shape: f32[8,128], index: 6, kind: output, shape index: {}]  }
   0x1   :  { %12 = vsyncpa [#allocation7], 0 }
   0x2   :  { %13 = vsyncpa [#allocation10], 0 }
   0x3   :  { %14 = vsyncpa [#allocation13], 0 }
   0x4   :  { %15 = vsyncpa [#allocation5], 0  ;;  %s784_s21 = smov [#allocation6]   ;;  %s620_s25 = scalar_lea.hbm %s970_s1, 2048 }
   0x5   :  { %s31_s22 = sshll.u32 %s784_s21, 4  ;;  %p621_p0 = scmp.ne.s32.totalorder %s970_s1, %s620_s25  ;;  %s32_s22 = int_to_ptr.vmem [resolvable:$true] %s31_s22 }
   0x6   :  { %p624_p1 = scmp.lt.u32.totalorder %s620_s25, %s970_s1 }
   0x8   :  { %p626_p2 = pnand %p624_p1, %p621_p0 }
   0xa   :  { %629 = shalt.err (!%p626_p2)
}
   0xb   :  { %s630_s30 = scalar_lea.vmem %s32_s22, 2048  ;;  %p635_p4 = scmp.lt.s32.totalorder %s32_s22, %s32_s22 }
   0xc   :  { %p631_p3 = scmp.ne.s32.totalorder %s32_s22, %s630_s30  ;;  %p636_p5 = scmp.lt.s32.totalorder %s630_s30, %s630_s30 }
   0xe   :  { %p637_p6 = por %p636_p5, %p635_p4 }
  0x10   :  { %p638_p7 = pnand %p637_p6, %p631_p3 }
  0x12   :  { %641 = shalt.err (!%p638_p7)
}
  0x13   :  { %s785_s7 = smov 128   ;;  %s786_s8 = smov 8  }
  0x14   :  { %37 = dma.hbm_to_vmem [thread:$0]  %s970_s1, 2048, %s32_s22, [#allocation7], %s785_s7, %s785_s7, %s786_s8  }
  0x15   :  { %s787_s11 = smov [#allocation9]   ;;  %s788_s13 = smov [#allocation3]  }
  0x16   :  { %s55_s12 = sshll.u32 %s787_s11, 4  ;;  %s22_s14 = sshll.u32 %s788_s13, 4  ;;  %s56_s12 = int_to_ptr.vmem [resolvable:$true] %s55_s12  ;;  %s23_s14 = int_to_ptr.vmem [resolvable:$true] %s22_s14 }
  0x17   :  { %s642_s17 = scalar_lea.hbm %s972_s3, 2048 }
  0x18   :  { %p643_p8 = scmp.ne.s32.totalorder %s972_s3, %s642_s17  ;;  %p646_p9 = scmp.lt.u32.totalorder %s642_s17, %s972_s3 }
  0x1a   :  { %p648_p10 = pnand %p646_p9, %p643_p8 }
  0x1c   :  { %651 = shalt.err (!%p648_p10)
}
  0x1d   :  { %s652_s1 = scalar_lea.vmem %s56_s12, 2048  ;;  %p657_p12 = scmp.lt.s32.totalorder %s56_s12, %s56_s12 }
  0x1e   :  { %p653_p11 = scmp.ne.s32.totalorder %s56_s12, %s652_s1  ;;  %p658_p13 = scmp.lt.s32.totalorder %s652_s1, %s652_s1 }
  0x20   :  { %p659_p0 = por %p658_p13, %p657_p12 }
  0x22   :  { %p660_p1 = pnand %p659_p0, %p653_p11 }
  0x24   :  { %663 = shalt.err (!%p660_p1)
}
  0x25   :  { %61 = dma.hbm_to_vmem [thread:$0]  %s972_s3, 2048, %s56_s12, [#allocation10], %s785_s7, %s785_s7, %s786_s8  }
  0x26   :  { %s664_s26 = scalar_lea.hbm %s969_s0, 128 }
  0x27   :  { %p665_p2 = scmp.ne.s32.totalorder %s969_s0, %s664_s26  ;;  %p668_p3 = scmp.lt.u32.totalorder %s664_s26, %s969_s0 }
  0x29   :  { %p670_p4 = pnand %p668_p3, %p665_p2 }
  0x2b   :  { %673 = shalt.err (!%p670_p4)
}
  0x2c   :  { %s674_s9 = scalar_lea.vmem %s23_s14, 128  ;;  %p679_p6 = scmp.lt.s32.totalorder %s23_s14, %s23_s14 }
  0x2d   :  { %p675_p5 = scmp.ne.s32.totalorder %s23_s14, %s674_s9  ;;  %p680_p7 = scmp.lt.s32.totalorder %s674_s9, %s674_s9 }
  0x2f   :  { %p681_p8 = por %p680_p7, %p679_p6 }
  0x31   :  { %p682_p9 = pnand %p681_p8, %p675_p5 }
  0x33   :  { %685 = shalt.err (!%p682_p9)
}
  0x34   :  { %25 = dma.hbm_to_vmem [thread:$0]  %s969_s0, 128, %s23_s14, [#allocation4]  }
  0x35   :  { %s789_s11 = smov [#allocation8]   ;;  %s790_s13 = smov [#allocation11]  }
  0x36   :  { %s43_s12 = sshll.u32 %s789_s11, 4  ;;  %s68_s15 = sshll.u32 %s790_s13, 4  ;;  %s44_s12 = int_to_ptr.vmem [resolvable:$true] %s43_s12  ;;  %s69_s15 = int_to_ptr.vmem [resolvable:$true] %s68_s15 }
  0x37   :  { %s686_s18 = scalar_lea.hbm %s971_s2, 2048 }
  0x38   :  { %p687_p10 = scmp.ne.s32.totalorder %s971_s2, %s686_s18  ;;  %p690_p11 = scmp.lt.u32.totalorder %s686_s18, %s971_s2 }
  0x3a   :  { %p692_p12 = pnand %p690_p11, %p687_p10 }
  0x3c   :  { %695 = shalt.err (!%p692_p12)
}
  0x3d   :  { %s696_s0 = scalar_lea.vmem %s44_s12, 2048  ;;  %p701_p0 = scmp.lt.s32.totalorder %s44_s12, %s44_s12 }
  0x3e   :  { %p697_p13 = scmp.ne.s32.totalorder %s44_s12, %s696_s0  ;;  %p702_p1 = scmp.lt.s32.totalorder %s696_s0, %s696_s0 }
  0x40   :  { %p703_p2 = por %p702_p1, %p701_p0 }
  0x42   :  { %p704_p3 = pnand %p703_p2, %p697_p13 }
  0x44   :  { %707 = shalt.err (!%p704_p3)
}
  0x45   :  { %49 = dma.hbm_to_vmem [thread:$0]  %s971_s2, 2048, %s44_s12, [#allocation7], %s785_s7, %s785_s7, %s786_s8  }
  0x46   :  { %s708_s25 = scalar_lea.hbm %s973_s4, 16 }
  0x47   :  { %p709_p4 = scmp.ne.s32.totalorder %s973_s4, %s708_s25  ;;  %p712_p5 = scmp.lt.u32.totalorder %s708_s25, %s973_s4 }
  0x49   :  { %p714_p6 = pnand %p712_p5, %p709_p4 }
  0x4b   :  { %717 = shalt.err (!%p714_p6)
}
  0x4c   :  { %s718_s30 = scalar_lea.vmem %s69_s15, 16  ;;  %s722_s9 = scalar_lea.vmem %s69_s15, 32 }
  0x4d   :  { %p719_p7 = scmp.ne.s32.totalorder %s69_s15, %s718_s30  ;;  %p723_p8 = scmp.lt.s32.totalorder %s69_s15, %s69_s15 }
  0x4e   :  { %p724_p9 = scmp.lt.s32.totalorder %s722_s9, %s718_s30 }
  0x50   :  { %p725_p10 = por %p724_p9, %p723_p8 }
  0x52   :  { %p726_p11 = pnand %p725_p10, %p719_p7 }
  0x54   :  { %729 = shalt.err (!%p726_p11)
}
  0x55   :  { %71 = dma.hbm_to_vmem [thread:$0]  %s973_s4, 16, %s69_s15, [#allocation10]  }
  0x56   :  { %s791_s8 = smov [#allocation12]   ;;  %s730_s12 = scalar_lea.hbm %s974_s5, 16 }
  0x57   :  { %s78_s3 = sshll.u32 %s791_s8, 4  ;;  %p731_p12 = scmp.ne.s32.totalorder %s974_s5, %s730_s12  ;;  %s79_s3 = int_to_ptr.vmem [resolvable:$true] %s78_s3 }
  0x58   :  { %p734_p13 = scmp.lt.u32.totalorder %s730_s12, %s974_s5 }
  0x5a   :  { %p736_p0 = pnand %p734_p13, %p731_p12 }
  0x5c   :  { %739 = shalt.err (!%p736_p0)
}
  0x5d   :  { %s740_s19 = scalar_lea.vmem %s79_s3, 16  ;;  %s744_s4 = scalar_lea.vmem %s79_s3, 32 }
  0x5e   :  { %p741_p1 = scmp.ne.s32.totalorder %s79_s3, %s740_s19  ;;  %p745_p2 = scmp.lt.s32.totalorder %s79_s3, %s79_s3 }
  0x5f   :  { %p746_p3 = scmp.lt.s32.totalorder %s744_s4, %s740_s19 }
  0x61   :  { %p747_p4 = por %p746_p3, %p745_p2 }
  0x63   :  { %p748_p5 = pnand %p747_p4, %p741_p1 }
  0x65   :  { %751 = shalt.err (!%p748_p5)
}
  0x66   :  { %81 = dma.hbm_to_vmem [thread:$0]  %s974_s5, 16, %s79_s3, [#allocation13]  }
  0x67   :  { %774 = dma.done.wait [#allocation4], 128  }
  0x68   :  { %775 = vsyncadd [#allocation4], 4294967168 }
  0x69   :  { %776 = dma.done.wait [#allocation7], 4096  }
  0x6a   :  { %777 = vsyncadd [#allocation7], 4294963200 }
  0x6b   :  { %778 = dma.done.wait [#allocation10], 2064  }
  0x6c   :  { %779 = vsyncadd [#allocation10], 4294965232 }
  0x6d   :  { %780 = dma.done.wait [#allocation13], 16  }
  0x6e   :  { %781 = vsyncadd [#allocation13], 4294967280  ;;  %v792_v0 = vmov 0   ;;  %v105_v1 = vld [vmem:[#allocation9] sm:$0xff]  ;;  %v106_v2 = vld [vmem:[#allocation9 + $0x8] sm:$0xff]  ;;  %v793_v10 = vmov 0.0|0.0   ;;  %v203_v35 = vlaneseq }
  0x6f   :  { %618 = vset.pattern.permute.xlu0 %v792_v0  ;;  %619 = vset.pattern.permute.xlu1 %v792_v0  ;;  %v256_v3 = vsub.f32 1.0, %v105_v1  ;;  %v257_v4 = vsub.f32 1.0, %v106_v2  ;;  %v107_v5 = vld [vmem:[#allocation9 + $0x10] sm:$0xff]  ;;  %v108_v6 = vld [vmem:[#allocation9 + $0x18] sm:$0xff]  ;;  %v109_v9 = vld [vmem:[#allocation9 + $0x20] sm:$0xff]  ;;  %vm794_vm0 = vmmov 0  }
  0x70   :  { %124 = vperm.xlu0 %618, %v105_v1   ;;  %v258_v7 = vsub.f32 1.0, %v107_v5  ;;  %v259_v8 = vsub.f32 1.0, %v108_v6  ;;  %581 = vmatprep.subr.bf16.mxu0 %v793_v10  ;;  %v110_v11 = vld [vmem:[#allocation9 + $0x28] sm:$0xff]  ;;  %v260_v12 = vsub.f32 1.0, %v109_v9  ;;  %v111_v14 = vld [vmem:[#allocation9 + $0x30] sm:$0xff]  ;;  %v112_v15 = vld [vmem:[#allocation9 + $0x38] sm:$0xff] }
  0x71   :  { %275 = vperm.xlu1 %619, %v256_v3   ;;  %v261_v13 = vsub.f32 1.0, %v110_v11  ;;  %v262_v16 = vsub.f32 1.0, %v111_v14  ;;  %v263_v17 = vsub.f32 1.0, %v112_v15  ;;  %v113_v18 = vld [vmem:[#allocation9 + $0x40] sm:$0xff]  ;;  %v114_v19 = vld [vmem:[#allocation9 + $0x48] sm:$0xff]  ;;  %v115_v22 = vld [vmem:[#allocation9 + $0x50] sm:$0xff] }
  0x72   :  { %v264_v20 = vsub.f32 1.0, %v113_v18  ;;  %v265_v21 = vsub.f32 1.0, %v114_v19  ;;  %v116_v23 = vld [vmem:[#allocation9 + $0x58] sm:$0xff]  ;;  %v266_v24 = vsub.f32 1.0, %v115_v22  ;;  %v117_v26 = vld [vmem:[#allocation9 + $0x60] sm:$0xff]  ;;  %v118_v27 = vld [vmem:[#allocation9 + $0x68] sm:$0xff] }
  0x73   :  { %v267_v25 = vsub.f32 1.0, %v116_v23  ;;  %v268_v28 = vsub.f32 1.0, %v117_v26  ;;  %v269_v29 = vsub.f32 1.0, %v118_v27  ;;  %v119_v30 = vld [vmem:[#allocation9 + $0x70] sm:$0xff]  ;;  %v120_v31 = vld [vmem:[#allocation9 + $0x78] sm:$0xff]  ;;  %v795_v34 = vmov 0.0  }
  0x74   :  { %129 = vperm.xlu0 %618, %v106_v2   ;;  %v270_v32 = vsub.f32 1.0, %v119_v30  ;;  %v271_v33 = vsub.f32 1.0, %v120_v31  ;;  %578 = vmatprep.mubr.msk.f32.mxu0 %vm794_vm0, %v795_v34  ;;  %v204_v36 = vshrl.u32 %v203_v35, 7  ;;  %v121_v37 = vld [vmem:[#allocation11] sm:$0x1]  ;;  %v225_v50 = vld [vmem:[#allocation6 + $0x8] sm:$0xff] }
  0x75   :  { %280 = vperm.xlu1 %619, %v257_v4   ;;  %v272_v39 = vsub.f32 1.0, %v121_v37  ;;  %v224_v46 = vld [vmem:[#allocation6] sm:$0xff]  ;;  %v376_v51 = vld [vmem:[#allocation8 + $0x8] sm:$0xff]  ;;  %v377_v62 = vld [vmem:[#allocation8 + $0x10] sm:$0xff]  ;;  %s796_s5 = smov [#allocation14]  }
  0x76   :  { %v205_v38 = vsub.s32 0, %v204_v36  ;;  %v375_v47 = vld [vmem:[#allocation8] sm:$0xff]  ;;  %v226_v4 = vld [vmem:[#allocation6 + $0x10] sm:$0xff]  ;;  %s516_s21 = sshll.u32 %s796_s5, 4  ;;  %s517_s21 = int_to_ptr.vmem [resolvable:$true] %s516_s21 }
  0x77   :  { %s752_s1 = scalar_lea.vmem %s517_s21, 128  ;;  %p757_p7 = scmp.lt.s32.totalorder %s517_s21, %s517_s21 }
  0x78   :  { %134 = vperm.xlu0 %618, %v107_v5   ;;  %v914_v40 = vrot.slane %v121_v37, %v205_v38  ;;  %v916_v41 = vrot.slane %v272_v39, %v205_v38  ;;  %v227_v5 = vld [vmem:[#allocation6 + $0x18] sm:$0xff]  ;;  %v381_v37 = vld [vmem:[#allocation8 + $0x30] sm:$0xff]  ;;  %p753_p6 = scmp.ne.s32.totalorder %s517_s21, %s752_s1  ;;  %p758_p8 = scmp.lt.s32.totalorder %s752_s1, %s752_s1 }
  0x79   :  { %139 = vperm.xlu1 %619, %v108_v6   ;;  %v378_v6 = vld [vmem:[#allocation8 + $0x18] sm:$0xff] }
  0x7a   :  { %p759_p9 = por %p758_p8, %p757_p7 }
  0x7c   :  { %285 = vperm.xlu0 %618, %v258_v7   ;;  %p760_p10 = pnand %p759_p9, %p753_p6 }
  0x7d   :  { %290 = vperm.xlu1 %619, %v259_v8  }
  0x80   :  { %144 = vperm.xlu0 %618, %v109_v9  }
  0x81   :  { %149 = vperm.xlu1 %619, %v110_v11  }
  0x84   :  { %295 = vperm.xlu0 %618, %v260_v12  }
  0x85   :  { %300 = vperm.xlu1 %619, %v261_v13  }
  0x88   :  { %154 = vperm.xlu0 %618, %v111_v14  }
  0x89   :  { %159 = vperm.xlu1 %619, %v112_v15  }
  0x8c   :  { %305 = vperm.xlu0 %618, %v262_v16  }
  0x8d   :  { %310 = vperm.xlu1 %619, %v263_v17  }
  0x90   :  { %164 = vperm.xlu0 %618, %v113_v18   ;;  %v379_v18 = vld [vmem:[#allocation8 + $0x20] sm:$0xff] }
  0x91   :  { %169 = vperm.xlu1 %619, %v114_v19  }
  0x94   :  { %315 = vperm.xlu0 %618, %v264_v20  }
  0x95   :  { %320 = vperm.xlu1 %619, %v265_v21  }
  0x98   :  { %174 = vperm.xlu0 %618, %v115_v22  }
  0x99   :  { %179 = vperm.xlu1 %619, %v116_v23  }
  0x9c   :  { %325 = vperm.xlu0 %618, %v266_v24   ;;  %v228_v24 = vld [vmem:[#allocation6 + $0x20] sm:$0xff] }
  0x9d   :  { %330 = vperm.xlu1 %619, %v267_v25   ;;  %v229_v25 = vld [vmem:[#allocation6 + $0x28] sm:$0xff] }
  0xa0   :  { %184 = vperm.xlu0 %618, %v117_v26   ;;  %v380_v26 = vld [vmem:[#allocation8 + $0x28] sm:$0xff] }
  0xa1   :  { %189 = vperm.xlu1 %619, %v118_v27  }
  0xa4   :  { %335 = vperm.xlu0 %618, %v268_v28  }
  0xa5   :  { %340 = vperm.xlu1 %619, %v269_v29  }
  0xa8   :  { %194 = vperm.xlu0 %618, %v119_v30  }
  0xa9   :  { %199 = vperm.xlu1 %619, %v120_v31  }
  0xac   :  { %345 = vperm.xlu0 %618, %v270_v32  }
  0xad   :  { %350 = vperm.xlu1 %619, %v271_v33  }
  0xef   :  { %v125_v42 = vpop.permute.xlu0 %124 }
  0xf0   :  { %v276_v43 = vpop.permute.xlu1 %275  ;;  %v208_v44 = vmul.f32 %v914_v40, %v125_v42 }
  0xf1   :  { %v359_v45 = vmul.f32 %v916_v41, %v276_v43 }
  0xf2   :  { %v240_v53 = vmul.f32 %v224_v46, %v208_v44  ;;  %v231_v46 = vld [vmem:[#allocation6 + $0x38] sm:$0xff] }
  0xf3   :  { %v130_v48 = vpop.permute.xlu0 %129  ;;  %v391_v54 = vmul.f32 %v375_v47, %v359_v45  ;;  %v230_v45 = vld [vmem:[#allocation6 + $0x30] sm:$0xff]  ;;  %v382_v47 = vld [vmem:[#allocation8 + $0x38] sm:$0xff] }
  0xf4   :  { %v209_v49 = vmul.f32 %v914_v40, %v130_v48  ;;  %v281_v52 = vpop.permute.xlu1 %280 }
  0xf5   :  { %v360_v55 = vmul.f32 %v916_v41, %v281_v52  ;;  %v407_v60 = vadd.f32 %v391_v54, %v240_v53 }
  0xf6   :  { %v241_v57 = vmul.f32 %v225_v50, %v209_v49 }
  0xf7   :  { %v135_v56 = vpop.permute.xlu0 %134  ;;  %v392_v58 = vmul.f32 %v376_v51, %v360_v55 }
  0xf8   :  { %v140_v59 = vpop.permute.xlu1 %139  ;;  %v210_v0 = vmul.f32 %v914_v40, %v135_v56 }
  0xf9   :  { %v408_v61 = vadd.f32 %v392_v58, %v241_v57  ;;  %v211_v1 = vmul.f32 %v914_v40, %v140_v59  ;;  %v383_v58 = vld [vmem:[#allocation8 + $0x40] sm:$0xff] }
  0xfa   :  { %v242_v12 = vmul.f32 %v226_v4, %v210_v0  ;;  %v232_v0 = vld [vmem:[#allocation6 + $0x40] sm:$0xff] }
  0xfb   :  { %v286_v63 = vpop.permute.xlu0 %285  ;;  %v582_v3 = vpack.c.bf16 %v408_v61, %v407_v60  ;;  %v243_v13 = vmul.f32 %v227_v5, %v211_v1  ;;  %v233_v1 = vld [vmem:[#allocation6 + $0x48] sm:$0xff] }
  0xfc   :  { %v361_v2 = vmul.f32 %v916_v41, %v286_v63  ;;  %v291_v7 = vpop.permute.xlu1 %290 }
  0xfd   :  { %v362_v9 = vmul.f32 %v916_v41, %v291_v7  ;;  %583 = vmatpush3.bf16.xpose.msra.mxu0 %v582_v3 }
  0xfe   :  { %v393_v8 = vmul.f32 %v377_v62, %v361_v2  ;;  %584 = vmatprep.subr.bf16.mxu0 %v793_v10  ;;  %v384_v2 = vld [vmem:[#allocation8 + $0x48] sm:$0xff] }
  0xff   :  { %v145_v11 = vpop.permute.xlu0 %144  ;;  %v394_v14 = vmul.f32 %v378_v6, %v362_v9 }
 0x100   :  { %v150_v15 = vpop.permute.xlu1 %149  ;;  %v409_v16 = vadd.f32 %v393_v8, %v242_v12  ;;  %v212_v20 = vmul.f32 %v914_v40, %v145_v11 }
 0x101   :  { %v410_v17 = vadd.f32 %v394_v14, %v243_v13  ;;  %v213_v21 = vmul.f32 %v914_v40, %v150_v15  ;;  %v385_v14 = vld [vmem:[#allocation8 + $0x50] sm:$0xff] }
 0x102   :  { %v244_v31 = vmul.f32 %v228_v24, %v212_v20  ;;  %v234_v20 = vld [vmem:[#allocation6 + $0x50] sm:$0xff] }
 0x103   :  { %v296_v19 = vpop.permute.xlu0 %295  ;;  %v585_v23 = vpack.c.bf16 %v410_v17, %v409_v16  ;;  %v245_v32 = vmul.f32 %v229_v25, %v213_v21  ;;  %v235_v21 = vld [vmem:[#allocation6 + $0x58] sm:$0xff] }
 0x104   :  { %v363_v22 = vmul.f32 %v916_v41, %v296_v19  ;;  %v301_v27 = vpop.permute.xlu1 %300 }
 0x105   :  { %v364_v29 = vmul.f32 %v916_v41, %v301_v27  ;;  %586 = vmatpush3.bf16.xpose.msra.mxu0 %v585_v23 }
 0x106   :  { %v395_v28 = vmul.f32 %v379_v18, %v363_v22  ;;  %587 = vmatprep.subr.bf16.mxu0 %v793_v10  ;;  %v386_v22 = vld [vmem:[#allocation8 + $0x58] sm:$0xff] }
 0x107   :  { %v155_v30 = vpop.permute.xlu0 %154  ;;  %v396_v33 = vmul.f32 %v380_v26, %v364_v29 }
 0x108   :  { %v160_v34 = vpop.permute.xlu1 %159  ;;  %v411_v35 = vadd.f32 %v395_v28, %v244_v31  ;;  %v214_v39 = vmul.f32 %v914_v40, %v155_v30 }
 0x109   :  { %v412_v36 = vadd.f32 %v396_v33, %v245_v32  ;;  %v215_v42 = vmul.f32 %v914_v40, %v160_v34  ;;  %v387_v33 = vld [vmem:[#allocation8 + $0x60] sm:$0xff] }
 0x10a   :  { %v246_v52 = vmul.f32 %v230_v45, %v214_v39  ;;  %v236_v39 = vld [vmem:[#allocation6 + $0x60] sm:$0xff] }
 0x10b   :  { %v306_v38 = vpop.permute.xlu0 %305  ;;  %v588_v44 = vpack.c.bf16 %v412_v36, %v411_v35  ;;  %v247_v53 = vmul.f32 %v231_v46, %v215_v42  ;;  %v237_v42 = vld [vmem:[#allocation6 + $0x68] sm:$0xff] }
 0x10c   :  { %v365_v43 = vmul.f32 %v916_v41, %v306_v38  ;;  %v311_v48 = vpop.permute.xlu1 %310 }
 0x10d   :  { %v366_v50 = vmul.f32 %v916_v41, %v311_v48  ;;  %589 = vmatpush3.bf16.xpose.msra.mxu0 %v588_v44 }
 0x10e   :  { %v397_v49 = vmul.f32 %v381_v37, %v365_v43  ;;  %590 = vmatprep.subr.bf16.mxu0 %v793_v10  ;;  %v388_v43 = vld [vmem:[#allocation8 + $0x68] sm:$0xff] }
 0x10f   :  { %v165_v51 = vpop.permute.xlu0 %164  ;;  %v398_v54 = vmul.f32 %v382_v47, %v366_v50 }
 0x110   :  { %v170_v55 = vpop.permute.xlu1 %169  ;;  %v413_v56 = vadd.f32 %v397_v49, %v246_v52  ;;  %v216_v60 = vmul.f32 %v914_v40, %v165_v51 }
 0x111   :  { %v414_v57 = vadd.f32 %v398_v54, %v247_v53  ;;  %v217_v61 = vmul.f32 %v914_v40, %v170_v55  ;;  %v389_v54 = vld [vmem:[#allocation8 + $0x70] sm:$0xff] }
 0x112   :  { %v248_v7 = vmul.f32 %v232_v0, %v216_v60  ;;  %v238_v60 = vld [vmem:[#allocation6 + $0x70] sm:$0xff] }
 0x113   :  { %v316_v59 = vpop.permute.xlu0 %315  ;;  %v591_v63 = vpack.c.bf16 %v414_v57, %v413_v56  ;;  %v249_v8 = vmul.f32 %v233_v1, %v217_v61  ;;  %v239_v61 = vld [vmem:[#allocation6 + $0x78] sm:$0xff] }
 0x114   :  { %v367_v62 = vmul.f32 %v916_v41, %v316_v59  ;;  %v321_v3 = vpop.permute.xlu1 %320 }
 0x115   :  { %v368_v5 = vmul.f32 %v916_v41, %v321_v3  ;;  %592 = vmatpush3.bf16.xpose.msra.mxu0 %v591_v63 }
 0x116   :  { %v399_v4 = vmul.f32 %v383_v58, %v367_v62  ;;  %593 = vmatprep.subr.bf16.mxu0 %v793_v10  ;;  %v390_v62 = vld [vmem:[#allocation8 + $0x78] sm:$0xff] }
 0x117   :  { %v175_v6 = vpop.permute.xlu0 %174  ;;  %v400_v9 = vmul.f32 %v384_v2, %v368_v5 }
 0x118   :  { %v180_v11 = vpop.permute.xlu1 %179  ;;  %v415_v12 = vadd.f32 %v399_v4, %v248_v7  ;;  %v218_v16 = vmul.f32 %v914_v40, %v175_v6 }
 0x119   :  { %v416_v13 = vadd.f32 %v400_v9, %v249_v8  ;;  %v219_v17 = vmul.f32 %v914_v40, %v180_v11  ;;  %v528_v8 = vld [vmem:[#allocation12] ss:$0 sm:$0xff] }
 0x11a   :  { %v250_v27 = vmul.f32 %v234_v20, %v218_v16 }
 0x11b   :  { %v326_v15 = vpop.permute.xlu0 %325  ;;  %v594_v19 = vpack.c.bf16 %v416_v13, %v415_v12  ;;  %v251_v28 = vmul.f32 %v235_v21, %v219_v17 }
 0x11c   :  { %v369_v18 = vmul.f32 %v916_v41, %v326_v15  ;;  %v331_v23 = vpop.permute.xlu1 %330 }
 0x11d   :  { %v370_v25 = vmul.f32 %v916_v41, %v331_v23  ;;  %595 = vmatpush3.bf16.xpose.msra.mxu0 %v594_v19 }
 0x11e   :  { %v401_v24 = vmul.f32 %v385_v14, %v369_v18  ;;  %596 = vmatprep.subr.bf16.mxu0 %v793_v10 }
 0x11f   :  { %v185_v26 = vpop.permute.xlu0 %184  ;;  %v402_v29 = vmul.f32 %v386_v22, %v370_v25 }
 0x120   :  { %v190_v30 = vpop.permute.xlu1 %189  ;;  %v417_v31 = vadd.f32 %v401_v24, %v250_v27  ;;  %v220_v35 = vmul.f32 %v914_v40, %v185_v26 }
 0x121   :  { %v418_v32 = vadd.f32 %v402_v29, %v251_v28  ;;  %v221_v36 = vmul.f32 %v914_v40, %v190_v30 }
 0x122   :  { %v252_v48 = vmul.f32 %v236_v39, %v220_v35 }
 0x123   :  { %v336_v34 = vpop.permute.xlu0 %335  ;;  %v597_v38 = vpack.c.bf16 %v418_v32, %v417_v31  ;;  %v253_v49 = vmul.f32 %v237_v42, %v221_v36 }
 0x124   :  { %v371_v37 = vmul.f32 %v916_v41, %v336_v34  ;;  %v341_v44 = vpop.permute.xlu1 %340 }
 0x125   :  { %v372_v46 = vmul.f32 %v916_v41, %v341_v44  ;;  %598 = vmatpush3.bf16.xpose.msra.mxu0 %v597_v38 }
 0x126   :  { %v403_v45 = vmul.f32 %v387_v33, %v371_v37  ;;  %599 = vmatprep.subr.bf16.mxu0 %v793_v10 }
 0x127   :  { %v195_v47 = vpop.permute.xlu0 %194  ;;  %v404_v50 = vmul.f32 %v388_v43, %v372_v46 }
 0x128   :  { %v200_v51 = vpop.permute.xlu1 %199  ;;  %v419_v52 = vadd.f32 %v403_v45, %v252_v48  ;;  %v222_v56 = vmul.f32 %v914_v40, %v195_v47 }
 0x129   :  { %v420_v53 = vadd.f32 %v404_v50, %v253_v49  ;;  %v223_v57 = vmul.f32 %v914_v40, %v200_v51  ;;  %v423_v40 = vld [vmem:[#allocation3] sm:$0xff] }
 0x12a   :  { %v254_v2 = vmul.f32 %v238_v60, %v222_v56 }
 0x12b   :  { %v346_v55 = vpop.permute.xlu0 %345  ;;  %v600_v59 = vpack.c.bf16 %v420_v53, %v419_v52  ;;  %v255_v3 = vmul.f32 %v239_v61, %v223_v57 }
 0x12c   :  { %v373_v58 = vmul.f32 %v916_v41, %v346_v55  ;;  %v351_v63 = vpop.permute.xlu1 %350 }
 0x12d   :  { %v374_v1 = vmul.f32 %v916_v41, %v351_v63  ;;  %601 = vmatpush3.bf16.xpose.msra.mxu0 %v600_v59 }
 0x12e   :  { %v405_v0 = vmul.f32 %v389_v54, %v373_v58  ;;  %602 = vmatprep.subr.bf16.mxu0 %v793_v10 }
 0x12f   :  { %v406_v4 = vmul.f32 %v390_v62, %v374_v1 }
 0x130   :  { %v421_v5 = vadd.f32 %v405_v0, %v254_v2 }
 0x131   :  { %v422_v6 = vadd.f32 %v406_v4, %v255_v3 }
 0x133   :  { %v603_v7 = vpack.c.bf16 %v422_v6, %v421_v5 }
 0x135   :  { %604 = vmatpush3.bf16.xpose.msra.mxu0 %v603_v7 }
 0x13c   :  { %579 = vmatmul.mubr.f32.vlgmr.msra.gmra.mrb[0].mxu0 %v423_v40 }
 0x20f   :  { %v491_v9 = vpop.f32.mrb[0].mxu0 }
 0x210   :  { %v508_v11 = vadd.f32 %v528_v8, %v491_v9  ;;  %v580_v12 = vpop.f32.mrb[1].mxu0 }
 0x212   :  { %509 = vst [vmem:[#allocation14] sm:$0xff] %v508_v11 }
 0x213   :  { %763 = shalt.err (!%p760_p10)
}
 0x214   :  { %s764_s22 = scalar_lea.hbm %s975_s6, 128 }
 0x215   :  { %p765_p11 = scmp.ne.s32.totalorder %s975_s6, %s764_s22  ;;  %p768_p12 = scmp.lt.u32.totalorder %s764_s22, %s975_s6 }
 0x217   :  { %p770_p13 = pnand %p768_p12, %p765_p11 }
 0x219   :  { %773 = shalt.err (!%p770_p13)
}
 0x21a   :  { %519 = dma.vmem_to_hbm [thread:$0]  %s517_s21, 128, %s975_s6, [#allocation5]  }
 0x21b   :  { %782 = dma.done.wait [#allocation5], 128  }
 0x21c   :  { %783 = vsyncadd [#allocation5], 4294967168 }
 0x21d   :  { %523 = vsyncpa [#allocation4], 1 }
 0x21e   :  { %524 = vsyncpa [#allocation7], 1 }
 0x21f   :  { %525 = vsyncpa [#allocation10], 1 }
 0x220   :  { %526 = vsyncpa [#allocation13], 1 }
 0x221   :  { %527 = vsyncpa [#allocation5], 1 }

</bundles_post_ra>
